<compile_context>
chip_gen: v6e
topology: v6e:2x2x1
jax: 0.10.0
libtpu: 0.0.40
codegen_flags: <defaults>
</compile_context>

<pallas_src>
import functools

import jax
import jax.numpy as jnp
from jax.experimental import pallas as pl
from jax.experimental.pallas import tpu as pltpu


# -----------------------------------------------------------------------------
# Pass 1: per-batch-item 2x2 max-pool + BatchNorm batch-statistics accumulation.
# Grid: (N,), "arbitrary" (the sum / sum-of-squares outputs are revisited).
# -----------------------------------------------------------------------------
def _pool_stats_kernel(x_ref, sel_e_ref, sel_o_ref, pooled_ref, sum_ref, ssq_ref):
    n = pl.program_id(0)

    x = x_ref[0]                                         # (C, H, W) f32
    C, H, W = x.shape
    Hp, Wp = H // 2, W // 2

    # Vertical (H) pooling: split the sublane dim, reduce the pair axis.
    xh = jnp.max(x.reshape(C, Hp, 2, W), axis=2)         # (C, Hp, W)

    # Horizontal (W) pooling via MXU lane-compaction: even/odd column selection
    # matrices gather the two phases as lane-dense slabs (exact: weights are 0/1),
    # avoiding lane-splitting reshapes / strided lane slices.
    xh2 = xh.reshape(C * Hp, W)                          # merge major dims (lane dim kept)
    pe = jnp.dot(xh2, sel_e_ref[...], preferred_element_type=jnp.float32)  # (C*Hp, Wp)
    po = jnp.dot(xh2, sel_o_ref[...], preferred_element_type=jnp.float32)
    xp2 = jnp.maximum(pe, po)                            # (C*Hp, Wp) pooled
    xp = xp2.reshape(C, Hp, Wp)

    pooled_ref[0] = xp.astype(pooled_ref.dtype)

    # Per-channel batch statistics (biased), accumulated across the batch grid.
    s1 = jnp.sum(jnp.sum(xp, axis=2), axis=1, keepdims=True)          # (C, 1)
    s2 = jnp.sum(jnp.sum(xp * xp, axis=2), axis=1, keepdims=True)     # (C, 1)

    @pl.when(n == 0)
    def _init():
        sum_ref[...] = jnp.zeros_like(sum_ref)
        ssq_ref[...] = jnp.zeros_like(ssq_ref)

    sum_ref[...] += s1
    ssq_ref[...] += s2


# -----------------------------------------------------------------------------
# Pass 2: BN apply -> 3x3 LBP conv (single im2col matmul) -> ReLU -> +residual
#         -> 1x1 conv + bias.   Grid: (N,), "parallel".
# Layout: (C, L) with L = Hp*Wp flattened row-major on the lane axis.
# -----------------------------------------------------------------------------
def _lbp_block_kernel(pooled_ref, scale_ref, shift_ref, w2_ref, w1_ref, b1_ref,
                      o_ref, pat_ref, *, wp):
    xp = pooled_ref[0]                                   # (C, L) f32, pooled (residual)
    C, L = xp.shape
    mm_dtype = pat_ref.dtype

    # BatchNorm apply: scale/shift precomputed (hoisted) in the wrapper as (C, 1).
    xn = xp * scale_ref[...] + shift_ref[...]            # (C, L)

    # Row-wrap masks for the horizontal taps (the vertical / out-of-range taps are
    # zero-filled implicitly by the slice ranges below -> exact "SAME" zero padding).
    col = jax.lax.broadcasted_iota(jnp.int32, (1, L), 1) % wp
    src_by_dx = {
        0: jnp.where(col != wp - 1, xn, 0.0),            # taps reading column x-1
        1: xn,
        2: jnp.where(col != 0, xn, 0.0),                 # taps reading column x+1
    }

    # Build the im2col operand (9*C, L) once, then a single MXU matmul with K = 9*C.
    pat_ref[...] = jnp.zeros(pat_ref.shape, pat_ref.dtype)
    for dy in range(3):
        for dx in range(3):
            t = dy * 3 + dx
            off = (dy - 1) * wp + (dx - 1)               # flattened spatial offset
            lo = max(0, -off)
            hi = L - max(0, off)
            v = src_by_dx[dx][:, lo + off:hi + off]      # (C, hi - lo), lane-offset slice
            pat_ref[t * C:(t + 1) * C, lo:hi] = v.astype(mm_dtype)

    conv = jnp.dot(w2_ref[...], pat_ref[...],
                   preferred_element_type=jnp.float32)   # (C, L)

    h = jnp.maximum(conv, 0.0) + xp                      # ReLU + residual (pooled, pre-BN)

    y = jnp.dot(w1_ref[...], h.astype(mm_dtype),
                preferred_element_type=jnp.float32)      # (Cout, L)
    y = y + b1_ref[...]                                  # (Cout, 1) bias broadcast

    o_ref[0] = y.astype(o_ref.dtype)


# -----------------------------------------------------------------------------
# Wrapper.  Public interface is NCHW, exactly like the PyTorch module.
# -----------------------------------------------------------------------------
def down_lbp(x_nchw, w3_oihw, gamma, beta, w1_oihw, b1, *,
             matmul_dtype=jnp.float32):
    N, C, H, W = x_nchw.shape
    assert H % 2 == 0 and W % 2 == 0
    Cout = w1_oihw.shape[0]
    Hp, Wp = H // 2, W // 2
    L = Hp * Wp

    x = x_nchw.astype(jnp.float32)

    # 0/1 even/odd column-selection matrices for the W-direction pooling (exact).
    wi = jnp.arange(W, dtype=jnp.int32)[:, None]
    ji = jnp.arange(Wp, dtype=jnp.int32)[None, :]
    sel_e = (wi == 2 * ji).astype(jnp.float32)           # (W, Wp)
    sel_o = (wi == 2 * ji + 1).astype(jnp.float32)       # (W, Wp)

    vmem_limit = 32 * 1024 * 1024  # re-derive per generation; fits v7x's 64 MiB VMEM

    # ---- Pass 1: pool + stats -------------------------------------------------
    pooled, psum, pssq = pl.pallas_call(
        _pool_stats_kernel,
        grid=(N,),
        in_specs=[
            pl.BlockSpec((1, C, H, W), lambda n: (n, 0, 0, 0)),
            pl.BlockSpec((W, Wp), lambda n: (0, 0)),
            pl.BlockSpec((W, Wp), lambda n: (0, 0)),
        ],
        out_specs=(
            pl.BlockSpec((1, C, Hp, Wp), lambda n: (n, 0, 0, 0)),
            pl.BlockSpec((C, 1), lambda n: (0, 0)),       # revisited accumulator
            pl.BlockSpec((C, 1), lambda n: (0, 0)),       # revisited accumulator
        ),
        out_shape=(
            jax.ShapeDtypeStruct((N, C, Hp, Wp), jnp.float32),
            jax.ShapeDtypeStruct((C, 1), jnp.float32),
            jax.ShapeDtypeStruct((C, 1), jnp.float32),
        ),
        compiler_params=pltpu.CompilerParams(
            dimension_semantics=("arbitrary",),
            vmem_limit_bytes=vmem_limit),
        cost_estimate=pl.CostEstimate(
            flops=int(N * C * H * W + 4 * N * C * Hp * W * Wp),
            transcendentals=0,
            bytes_accessed=int(4 * (N * C * H * W + N * C * L + 2 * C + 2 * W * Wp))),
    )(x, sel_e, sel_o)

    # ---- Fold BN batch stats into a per-channel scale/shift (tiny, hoisted) ----
    cnt = jnp.float32(N * L)
    mean = psum[:, 0] / cnt
    var = jnp.maximum(pssq[:, 0] / cnt - mean * mean, 0.0)   # biased variance
    inv = jax.lax.rsqrt(var + 1e-5)
    g = gamma.astype(jnp.float32)
    scale = (g * inv).reshape(C, 1)
    shift = (beta.astype(jnp.float32) - g * inv * mean).reshape(C, 1)

    # Weights in matmul layout (tiny one-time transforms).
    # w2[co, (ky*3+kx)*C + ci] = w3[co, ci, ky, kx]
    w2 = jnp.transpose(w3_oihw.astype(jnp.float32), (0, 2, 3, 1)).reshape(C, 9 * C)
    w2 = w2.astype(matmul_dtype)
    w1m = w1_oihw.astype(jnp.float32)[:, :, 0, 0].astype(matmul_dtype)   # (Cout, C)
    b1c = b1.astype(jnp.float32).reshape(Cout, 1)

    pooled_flat = pooled.reshape(N, C, L)                # free reshape (contiguous merge)

    # ---- Pass 2: main block ----------------------------------------------------
    out_flat = pl.pallas_call(
        functools.partial(_lbp_block_kernel, wp=Wp),
        grid=(N,),
        in_specs=[
            pl.BlockSpec((1, C, L), lambda n: (n, 0, 0)),
            pl.BlockSpec((C, 1), lambda n: (0, 0)),
            pl.BlockSpec((C, 1), lambda n: (0, 0)),
            pl.BlockSpec((C, 9 * C), lambda n: (0, 0)),
            pl.BlockSpec((Cout, C), lambda n: (0, 0)),
            pl.BlockSpec((Cout, 1), lambda n: (0, 0)),
        ],
        out_specs=pl.BlockSpec((1, Cout, L), lambda n: (n, 0, 0)),
        out_shape=jax.ShapeDtypeStruct((N, Cout, L), jnp.float32),
        scratch_shapes=[pltpu.VMEM((9 * C, L), matmul_dtype)],   # im2col buffer
        compiler_params=pltpu.CompilerParams(
            dimension_semantics=("parallel",),           # megacore split on v7x
            vmem_limit_bytes=vmem_limit),
        cost_estimate=pl.CostEstimate(
            flops=int(2 * N * L * C * (9 * C) + 2 * N * L * Cout * C),
            transcendentals=0,
            bytes_accessed=int(4 * (N * C * L + N * Cout * L) + 4 * (C * 9 * C + Cout * C))),
    )(pooled_flat, scale, shift, w2, w1m, b1c)

    return out_flat.reshape(N, Cout, Hp, Wp)             # free reshape (contiguous split)


# -----------------------------------------------------------------------------
# Pure-JAX NCHW reference mirroring the PyTorch forward.
# -----------------------------------------------------------------------------
def down_lbp_reference(x, w3, gamma, beta, w1, b1):
    N, C, H, W = x.shape
    Hp, Wp = H // 2, W // 2
    xp = jnp.max(x.reshape(N, C, Hp, 2, Wp, 2), axis=(3, 5))
    mean = jnp.mean(xp, axis=(0, 2, 3), keepdims=True)
    var = jnp.mean((xp - mean) ** 2, axis=(0, 2, 3), keepdims=True)
    xn = (xp - mean) * jax.lax.rsqrt(var + 1e-5)
    xn = xn * gamma.reshape(1, C, 1, 1) + beta.reshape(1, C, 1, 1)
    conv = jax.lax.conv_general_dilated(
        xn, w3, (1, 1), 'SAME',
        dimension_numbers=('NCHW', 'OIHW', 'NCHW'),
        precision=jax.lax.Precision.HIGHEST)
    h = jnp.maximum(conv, 0.0) + xp
    y = jax.lax.conv_general_dilated(
        h, w1, (1, 1), 'SAME',
        dimension_numbers=('NCHW', 'OIHW', 'NCHW'),
        precision=jax.lax.Precision.HIGHEST)
    return y + b1.reshape(1, -1, 1, 1)


if __name__ == "__main__":
    key = jax.random.PRNGKey(0)
    k1, k2, k3, k4, k5 = jax.random.split(key, 5)

    N, Cin, Cout, H, W = 2, 4, 8, 16, 16
    sparsity = 0.5

    # ConvLBP weights (OIHW): bernoulli(0.5)*2-1, zeroed where rand > sparsity.
    bern = (jax.random.uniform(k1, (Cin, Cin, 3, 3)) < 0.5).astype(jnp.float32) * 2.0 - 1.0
    mask_inactive = jax.random.uniform(k2, (Cin, Cin, 3, 3)) > sparsity
    w3 = jnp.where(mask_inactive, 0.0, bern)

    # BatchNorm2d default-initialized affine params.
    gamma = jnp.ones((Cin,), jnp.float32)
    beta = jnp.zeros((Cin,), jnp.float32)

    # Conv2d 1x1 weights + bias (deterministic synthetic init).
    w1 = 0.1 * jax.random.normal(k3, (Cout, Cin, 1, 1), jnp.float32)
    b1 = 0.1 * jax.random.normal(k4, (Cout,), jnp.float32)

    x = jax.random.normal(k5, (N, Cin, H, W), jnp.float32)

    ref = jax.block_until_ready(down_lbp_reference(x, w3, gamma, beta, w1, b1))

    # f32 matmul path (numerically tight vs. the HIGHEST-precision reference).
    out = jax.block_until_ready(down_lbp(x, w3, gamma, beta, w1, b1))
    assert out.shape == (N, Cout, H // 2, W // 2), out.shape
    assert jnp.allclose(out, ref, rtol=1e-3, atol=1e-3), float(jnp.max(jnp.abs(out - ref)))

    # bf16 matmul operands (v6e/v7x MXU fast path), f32 accumulation.
    out_bf16 = jax.block_until_ready(
        down_lbp(x, w3, gamma, beta, w1, b1, matmul_dtype=jnp.bfloat16))
    assert jnp.allclose(out_bf16, ref, rtol=5e-2, atol=5e-2), \
        float(jnp.max(jnp.abs(out_bf16 - ref)))

    print("KERNEL_OK")
</pallas_src>

<mosaic_0001>
module attributes {stable_mosaic.version = 11 : i64} {
  func.func @_pool_stats_kernel(%arg0: i32, %arg1: memref<1x4x16x16xf32, #tpu.memory_space<vmem>>, %arg2: memref<16x8xf32, #tpu.memory_space<vmem>>, %arg3: memref<16x8xf32, #tpu.memory_space<vmem>>, %arg4: memref<1x4x8x8xf32, #tpu.memory_space<vmem>>, %arg5: memref<4x1xf32, #tpu.memory_space<vmem>>, %arg6: memref<4x1xf32, #tpu.memory_space<vmem>>) attributes {dimension_semantics = [#tpu.dimension_semantics<arbitrary>], iteration_bounds = array<i64: 2>, scalar_prefetch = 0 : i64, scratch_operands = 0 : i64, tpu.core_type = #tpu.core_type<tc>, window_params = [{transform_indices = @transform_0, window_bounds = array<i64: 1, 4, 16, 16>}, {pipeline_mode = #tpu.pipeline_mode<synchronous>, transform_indices = @transform_1, window_bounds = array<i64: 16, 8>}, {pipeline_mode = #tpu.pipeline_mode<synchronous>, transform_indices = @transform_2, window_bounds = array<i64: 16, 8>}, {transform_indices = @transform_3, window_bounds = array<i64: 1, 4, 8, 8>}, {pipeline_mode = #tpu.pipeline_mode<synchronous>, transform_indices = @transform_4, window_bounds = array<i64: 4, 1>}, {pipeline_mode = #tpu.pipeline_mode<synchronous>, transform_indices = @transform_5, window_bounds = array<i64: 4, 1>}]} {
    %c0 = arith.constant 0 : index
    %c0_0 = arith.constant 0 : index
    %c0_1 = arith.constant 0 : index
    %c0_2 = arith.constant 0 : index
    %0 = vector.load %arg1[%c0, %c0_0, %c0_1, %c0_2] : memref<1x4x16x16xf32, #tpu.memory_space<vmem>>, vector<1x4x16x16xf32>
    %1 = vector.shape_cast %0 : vector<1x4x16x16xf32> to vector<4x16x16xf32>
    %2 = vector.shape_cast %1 : vector<4x16x16xf32> to vector<4x8x2x16xf32>
    %cst = arith.constant dense<0xFF800000> : vector<4x8x16xf32>
    %3 = vector.multi_reduction <maximumf>, %2, %cst [2] : vector<4x8x2x16xf32> to vector<4x8x16xf32>
    %4 = vector.shape_cast %3 : vector<4x8x16xf32> to vector<32x16xf32>
    %c0_3 = arith.constant 0 : index
    %c0_4 = arith.constant 0 : index
    %5 = vector.load %arg2[%c0_3, %c0_4] : memref<16x8xf32, #tpu.memory_space<vmem>>, vector<16x8xf32>
    %cst_5 = arith.constant dense<0.000000e+00> : vector<32x8xf32>
    %6 = tpu.matmul %4, %5, %cst_5 {dimension_numbers = #tpu.dot_dimension_numbers<[1], [0], [0], [1], [0, 0, 1, 1], [], []>} : vector<32x16xf32>, vector<16x8xf32>, vector<32x8xf32> -> vector<32x8xf32>
    %c0_6 = arith.constant 0 : index
    %c0_7 = arith.constant 0 : index
    %7 = vector.load %arg3[%c0_6, %c0_7] : memref<16x8xf32, #tpu.memory_space<vmem>>, vector<16x8xf32>
    %cst_8 = arith.constant dense<0.000000e+00> : vector<32x8xf32>
    %8 = tpu.matmul %4, %7, %cst_8 {dimension_numbers = #tpu.dot_dimension_numbers<[1], [0], [0], [1], [0, 0, 1, 1], [], []>} : vector<32x16xf32>, vector<16x8xf32>, vector<32x8xf32> -> vector<32x8xf32>
    %9 = arith.maximumf %6, %8 : vector<32x8xf32>
    %10 = vector.shape_cast %9 : vector<32x8xf32> to vector<4x8x8xf32>
    %c0_9 = arith.constant 0 : index
    %c0_10 = arith.constant 0 : index
    %c0_11 = arith.constant 0 : index
    %c0_12 = arith.constant 0 : index
    %11 = vector.load %arg4[%c0_9, %c0_10, %c0_11, %c0_12] : memref<1x4x8x8xf32, #tpu.memory_space<vmem>>, vector<1x4x8x8xf32>
    %12 = vector.shape_cast %11 : vector<1x4x8x8xf32> to vector<4x8x8xf32>
    %13 = vector.shape_cast %10 : vector<4x8x8xf32> to vector<1x4x8x8xf32>
    tpu.vector_store %arg4[%c0_9, %c0_10, %c0_11, %c0_12], %13 {strides = array<i32>} : memref<1x4x8x8xf32, #tpu.memory_space<vmem>>, vector<1x4x8x8xf32>,
    %cst_13 = arith.constant dense<0.000000e+00> : vector<4x8xf32>
    %14 = vector.multi_reduction <add>, %10, %cst_13 [2] : vector<4x8x8xf32> to vector<4x8xf32>
    %cst_14 = arith.constant dense<0.000000e+00> : vector<4xf32>
    %15 = vector.multi_reduction <add>, %14, %cst_14 [1] : vector<4x8xf32> to vector<4xf32>
    %16 = vector.shape_cast %15 : vector<4xf32> to vector<4x1xf32>
    %17 = arith.mulf %10, %10 : vector<4x8x8xf32>
    %cst_15 = arith.constant dense<0.000000e+00> : vector<4x8xf32>
    %18 = vector.multi_reduction <add>, %17, %cst_15 [2] : vector<4x8x8xf32> to vector<4x8xf32>
    %cst_16 = arith.constant dense<0.000000e+00> : vector<4xf32>
    %19 = vector.multi_reduction <add>, %18, %cst_16 [1] : vector<4x8xf32> to vector<4xf32>
    %20 = vector.shape_cast %19 : vector<4xf32> to vector<4x1xf32>
    %c0_i32 = arith.constant 0 : i32
    %21 = arith.cmpi eq, %arg0, %c0_i32 : i32
    %22 = arith.extui %21 : i1 to i32
    %c0_i32_17 = arith.constant 0 : i32
    %23 = arith.cmpi ne, %22, %c0_i32_17 : i32
    scf.if %23 {
      %cst_26 = arith.constant 0.000000e+00 : f32
      %30 = vector.broadcast %cst_26 : f32 to vector<4x1xf32>
      %c0_27 = arith.constant 0 : index
      %c0_28 = arith.constant 0 : index
      %31 = vector.load %arg5[%c0_27, %c0_28] : memref<4x1xf32, #tpu.memory_space<vmem>>, vector<4x1xf32>
      tpu.vector_store %arg5[%c0_27, %c0_28], %30 {strides = array<i32>} : memref<4x1xf32, #tpu.memory_space<vmem>>, vector<4x1xf32>,
      %cst_29 = arith.constant 0.000000e+00 : f32
      %32 = vector.broadcast %cst_29 : f32 to vector<4x1xf32>
      %c0_30 = arith.constant 0 : index
      %c0_31 = arith.constant 0 : index
      %33 = vector.load %arg6[%c0_30, %c0_31] : memref<4x1xf32, #tpu.memory_space<vmem>>, vector<4x1xf32>
      tpu.vector_store %arg6[%c0_30, %c0_31], %32 {strides = array<i32>} : memref<4x1xf32, #tpu.memory_space<vmem>>, vector<4x1xf32>,
    } else {
    }
    %c0_18 = arith.constant 0 : index
    %c0_19 = arith.constant 0 : index
    %24 = vector.load %arg5[%c0_18, %c0_19] : memref<4x1xf32, #tpu.memory_space<vmem>>, vector<4x1xf32>
    %25 = arith.addf %24, %16 : vector<4x1xf32>
    %c0_20 = arith.constant 0 : index
    %c0_21 = arith.constant 0 : index
    %26 = vector.load %arg5[%c0_20, %c0_21] : memref<4x1xf32, #tpu.memory_space<vmem>>, vector<4x1xf32>
    tpu.vector_store %arg5[%c0_20, %c0_21], %25 {strides = array<i32>} : memref<4x1xf32, #tpu.memory_space<vmem>>, vector<4x1xf32>,
    %c0_22 = arith.constant 0 : index
    %c0_23 = arith.constant 0 : index
    %27 = vector.load %arg6[%c0_22, %c0_23] : memref<4x1xf32, #tpu.memory_space<vmem>>, vector<4x1xf32>
    %28 = arith.addf %27, %20 : vector<4x1xf32>
    %c0_24 = arith.constant 0 : index
    %c0_25 = arith.constant 0 : index
    %29 = vector.load %arg6[%c0_24, %c0_25] : memref<4x1xf32, #tpu.memory_space<vmem>>, vector<4x1xf32>
    tpu.vector_store %arg6[%c0_24, %c0_25], %28 {strides = array<i32>} : memref<4x1xf32, #tpu.memory_space<vmem>>, vector<4x1xf32>,
    return
  }
  func.func @transform_0(%arg0: i32) -> (i32, i32, i32, i32) {
    %c0_i32 = arith.constant 0 : i32
    %c0_i32_0 = arith.constant 0 : i32
    %c0_i32_1 = arith.constant 0 : i32
    %c0_i32_2 = arith.constant 0 : i32
    return %arg0, %c0_i32, %c0_i32_0, %c0_i32_1 : i32, i32, i32, i32
  }
  func.func @transform_1(%arg0: i32) -> (i32, i32) {
    %c0_i32 = arith.constant 0 : i32
    %c0_i32_0 = arith.constant 0 : i32
    %c0_i32_1 = arith.constant 0 : i32
    return %c0_i32, %c0_i32_0 : i32, i32
  }
  func.func @transform_2(%arg0: i32) -> (i32, i32) {
    %c0_i32 = arith.constant 0 : i32
    %c0_i32_0 = arith.constant 0 : i32
    %c0_i32_1 = arith.constant 0 : i32
    return %c0_i32, %c0_i32_0 : i32, i32
  }
  func.func @transform_3(%arg0: i32) -> (i32, i32, i32, i32) {
    %c0_i32 = arith.constant 0 : i32
    %c0_i32_0 = arith.constant 0 : i32
    %c0_i32_1 = arith.constant 0 : i32
    %c0_i32_2 = arith.constant 0 : i32
    return %arg0, %c0_i32, %c0_i32_0, %c0_i32_1 : i32, i32, i32, i32
  }
  func.func @transform_4(%arg0: i32) -> (i32, i32) {
    %c0_i32 = arith.constant 0 : i32
    %c0_i32_0 = arith.constant 0 : i32
    %c0_i32_1 = arith.constant 0 : i32
    return %c0_i32, %c0_i32_0 : i32, i32
  }
  func.func @transform_5(%arg0: i32) -> (i32, i32) {
    %c0_i32 = arith.constant 0 : i32
    %c0_i32_0 = arith.constant 0 : i32
    %c0_i32_1 = arith.constant 0 : i32
    return %c0_i32, %c0_i32_0 : i32, i32
  }
}

</mosaic_0001>

<bundles_post_ra>
// kernel: tpu_custom_call.1
= control target key start
LH: loop header
LB: loop body
LE: loop exit
PB: predicated region body
PF: predicated region fallthrough
CT: control target
= control target key end

     0   :  { %11 = vsyncpa [#allocation3], 0  ;;  %s1676_s0 = inlined_call_operand.hbm [shape: f32[2,4,16,16], index: 0, kind: input, shape index: {}]   ;;  %s1677_s1 = inlined_call_operand.vmem [shape: f32[16,8], index: 1, kind: input, shape index: {}]   ;;  %s1678_s2 = inlined_call_operand.vmem [shape: f32[16,8], index: 2, kind: input, shape index: {}]   ;;  %s1679_s3 = inlined_call_operand.hbm [shape: f32[2,4,8,8], index: 3, kind: output, shape index: {0}]   ;;  %s1680_s4 = inlined_call_operand.vmem [shape: f32[4,1], index: 4, kind: output, shape index: {1}]   ;;  %s1681_s5 = inlined_call_operand.vmem [shape: f32[4,1], index: 5, kind: output, shape index: {2}]  }
   0x1   :  { %13 = vsyncpa [#allocation3 + $0x1], 0 }
   0x2   :  { %14 = vsyncpa [#allocation4], 0 }
   0x3   :  { %16 = vsyncpa [#allocation4 + $0x1], 0  ;;  %s1353_s18 = smov 0   ;;  %s1355_s19 = smov 0  }
   0x4   :  { %s1357_s20 = smov 0   ;;  %s1359_s21 = smov 0  }
   0x5 LB: > { %s1374_s22 = sadd.s32 4294967295, %s1313_s21   ;;  %s1104_s23 = sadd.s32 4294967294, %s1313_s21   ;;  %s1313_s21 = sphi %s1359_s21, %s1696_s21   ;;  %s1309_s20 = sphi %s1357_s20, %s1695_s20   ;;  %s1305_s19 = sphi %s1355_s19, %s1694_s19   ;;  %s1301_s18 = sphi %s1353_s18, %s1693_s18  }
   0x6   : > { %s1378_s24 = sadd.s32 1, %s1313_s21   ;;  %s29_s25 = sadd.s32 1, %s1309_s20 }
   0x7   : > { %s26_s26 = ssub.s32 %s1313_s21, %s1378_s24  ;;  %p36_p0 = scmp.ne.s32.totalorder %s1309_s20, %s1305_s19 }
   0x8   : > { %p27_p1 = scmp.eq.s32.totalorder %s26_s26, 0  ;;  %p37_p2 = scmp.eq.s32.totalorder %s1313_s21, 0 }
   0x9   : > { %p42_p3 = scmp.ne.s32.totalorder %s1305_s19, %s1301_s18  ;;  %p43_p4 = scmp.eq.s32.totalorder %s1374_s22, 0 }
   0xa   : > { %s1390_s27 = scalar_select %p27_p1, %s1309_s20, %s29_s25  }
   0xb   : > { %p1392_p5 = por %p37_p2, %p36_p0  ;;  %p1396_p6 = por %p43_p4, %p42_p3 }
   0xc   : > { %p108_p7 = scmp.eq.s32.totalorder %s1374_s22, 1  ;;  %p114_p8 = scmp.eq.s32.totalorder %s1104_s23, 1 }
   0xd   : > { %s1685_s29 = scalar_select %p1396_p6, 1, 0 }
   0xe   : > { %p1173_p10 = scmp.lt.s32.totalorder %s1313_s21, 2  ;;  %p1403_p11 = por %p108_p7, %p36_p0 }
   0xf   : > { %p1407_p12 = por %p114_p8, %p42_p3  ;;  %s182_s7 = sand.u32 1, %s1309_s20  }
  0x10   : > { %s1686_s30 = scalar_select %p1403_p11, 1, 0 }
  0x11   : > { %s1687_s6 = scalar_select %p1407_p12, 1, 0 }
  0x12   : > { %s1127_s8 = sshll.u32 %s1313_s21, 10  ;;  %s1107_s9 = sshll.u32 %s182_s7, 6 }
  0x13   : > { %s1416_s12 = scalar_lea.hbm %s1676_s0, %s1127_s8  ;;  %s186_s13 = scalar_lea.vmem [#allocation2], %s1107_s9 }
  0x14   : > { %s193_s14 = sshll.u32 %s186_s13, 4  ;;  %p1420_p13 = pnand %p1173_p10, %p1392_p5  ;;  %s1424_s14 = int_to_ptr.vmem [resolvable:$true] %s193_s14 }
  0x15   : > { %s1426_s16 = scalar_lea.sflag [#allocation3], %s182_s7  ;;  %s1221_s17 = scalar_lea.hbm %s1416_s12, 1024 }
  0x16   : > { %p1222_p0 = scmp.ne.s32.totalorder %s1416_s12, %s1221_s17  ;;  %p1223_p1 = pneg %p1420_p13 }
  0x17   : > { %s1226_s26 = scalar_lea.hbm %s1676_s0, 2048  ;;  %p1227_p4 = scmp.lt.s32.totalorder %s1416_s12, %s1676_s0 }
  0x18   : > { %p1224_p2 = pnand %p1223_p1, %p1222_p0  ;;  %p1228_p5 = scmp.lt.s32.totalorder %s1226_s26, %s1221_s17 }
  0x1a   : > { %p1225_p3 = pneg %p1224_p2  ;;  %p1229_p7 = por %p1228_p5, %p1227_p4 }
  0x1c   : > { %p1230_p8 = pnand %p1229_p7, %p1225_p3 }
  0x1e   : > { %1233 = shalt.err (!%p1230_p8)
}
  0x1f   : > { %s1234_s7 = scalar_lea.vmem %s1424_s14, 1024  ;;  %s1315_s9 = smov [#allocation2]  }
  0x20   : > { %p1235_p10 = scmp.ne.s32.totalorder %s1424_s14, %s1234_s7  ;;  %s1239_s10 = sshll.u32 %s1315_s9, 4  ;;  %s1240_s10 = int_to_ptr.vmem [resolvable:$false] %s1239_s10 }
  0x21   : > { %s1241_s11 = scalar_lea.vmem %s1240_s10, 2048  ;;  %p1242_p2 = scmp.lt.s32.totalorder %s1424_s14, %s1240_s10 }
  0x22   : > { %p1237_p9 = pnand %p1235_p10, %p1223_p1  ;;  %p1243_p12 = scmp.lt.s32.totalorder %s1241_s11, %s1234_s7 }
  0x24   : > { %p1238_p0 = pneg %p1237_p9  ;;  %p1244_p11 = por %p1243_p12, %p1242_p2 }
  0x26   : > { %p1245_p6 = pnand %p1244_p11, %p1238_p0 }
  0x28   : > { %1248 = shalt.err (!%p1245_p6)
}
  0x29   : > { %s1316_s13 = smov 128   ;;  %s1317_s17 = smov 8  }
  0x2a   : > { %1168 = dma.hbm_to_vmem [thread:$0]  (!%p1420_p13), %s1416_s12, 1024, %s1424_s14, %s1426_s16, %s1316_s13, %s1316_s13, %s1317_s17  }
  0x2b   : > { %p1110_p9 = scmp.ge.s32.totalorder %s1313_s21, 1  ;;  %p201_p1 = scmp.lt.s32.totalorder %s1313_s21, 3 }
  0x2d   : > { %p202_p3 = pnand %p1110_p9, %p201_p1 }
  0x2e   : > { %s1450_s23 = sand.u32 (!%p202_p3), 1, %s1305_s19   ;;  %p1689_p6 = scmp.ne.s32.totalorder (!%p202_p3), %s1685_s29, 0 }
  0x2f   : > { %205 = sbr.rel (%p202_p3) target bundleno = 648 (0x288), region = 32  ;;  %s1111_s25 = sshll.u32 (!%p202_p3), %s1450_s23, 6 }
  0x30   : > { %s208_s26 = scalar_lea.sflag (!%p202_p3), [#allocation3], %s1450_s23  ;;  %s1454_s28 = scalar_lea.vmem (!%p202_p3), [#allocation2], %s1111_s25 }
  0x34   : > { %1292 = dma.done.wait (%p1689_p6), %s208_s26, 1024  }
  0x35   : > { %1294 = vsyncadd (%p1689_p6), %s208_s26, 4294966272  ;;  %v258_v0 = vlaneseq  ;;  %v1318_v1 = vmov 1983009808   ;;  %v648_v6 = vld [vmem:[%s1677_s1 + $0x8] sm:$0xff]  ;;  %v647_v8 = vld [vmem:[%s1677_s1] sm:$0xff]  ;;  %vm422_vm0 = vcmask 123904  }
  0x36   : > { %v256_v2 = vunpack.c.l.s4 %v1318_v1  ;;  %v811_v7 = vld [vmem:[%s1678_s2 + $0x8] sm:$0xff]  ;;  %1141 = vmatprep.subr.mxu0 %v648_v6  ;;  %v810_v9 = vld [vmem:[%s1678_s2] sm:$0xff]  ;;  %v240_v15 = vld [vmem:[%s1454_s28 + $0x10] sm:$0xff]  ;;  %vm681_vm1 = vcmask 1041409   ;;  %vm683_vm2 = vcmask 1042434   ;;  %vm685_vm3 = vcmask 1043459  }
  0x37   : > { %v1461_v3 = vshrl.u32 %v258_v0, 7  ;;  %1151 = vmatprep.subr.mxu1 %v811_v7  ;;  %v238_v10 = vld [vmem:[%s1454_s28] sm:$0xff]  ;;  %v239_v11 = vld [vmem:[%s1454_s28 + $0x8] sm:$0xff]  ;;  %1142 = vmatpush3.msra.mxu0 %v648_v6  ;;  %v288_v17 = vcombine.high %v240_v15, %v240_v15  ;;  %vm687_vm4 = vcmask 1044484   ;;  %vm689_vm5 = vcmask 1045509   ;;  %s1112_s10 = sshll.u32 %s1450_s23, 5 }
  0x38   : > { %v257_v4 = vunpack.c.0.s8 %v256_v2  ;;  %1152 = vmatpush3.msra.mxu1 %v811_v7  ;;  %v254_v12 = vcombine.high %v238_v10, %v238_v10  ;;  %v271_v14 = vcombine.high %v239_v11, %v239_v11  ;;  %1143 = vmatprep.subr.mxu0 %v647_v8  ;;  %vm691_vm6 = vcmask 1046534   ;;  %s1581_s11 = scalar_lea.vmem [#allocation5], %s1112_s10  ;;  %p1121_p11 = scmp.ne.s32.totalorder %s1374_s22, 0 }
  0x39   : > { %1153 = vmatprep.subr.mxu1 %v810_v9  ;;  %1144 = vmatpush3.msra.mxu0 %v647_v8  ;;  %vm693_vm7 = vcmask 1047559   ;;  %vm716_vm8 = vcmask 130048   ;;  %vm901_vm9 = vcmask 64512   ;;  %vm944_vm10 = vcmask 60416  }
  0x3a   : > { %v1464_v5 = vsub.s32 %v257_v4, %v1461_v3  ;;  %1154 = vmatpush3.msra.mxu1 %v810_v9 }
  0x3c   : > { %v261_v13 = vrot.slane %v238_v10, %v1464_v5  ;;  %v278_v16 = vrot.slane %v239_v11, %v1464_v5  ;;  %v1484_v18 = vrot.slane %v240_v15, %v1464_v5  ;;  %v268_v19 = vrot.slane %v254_v12, %v1464_v5  ;;  %v241_v10 = vld [vmem:[%s1454_s28 + $0x18] sm:$0xff] }
  0x3d   : > { %v285_v21 = vrot.slane %v271_v14, %v1464_v5  ;;  %v1491_v26 = vrot.slane %v288_v17, %v1464_v5 }
  0x3e   : > { %v269_v20 = vcombine.high %v261_v13, %v261_v13  ;;  %v423_v22 = vsel %vm422_vm0, %v261_v13, -inf  ;;  %v286_v23 = vcombine.high %v278_v16, %v278_v16  ;;  %v451_v25 = vsel %vm422_vm0, %v278_v16, -inf }
  0x3f   : > { %v424_v24 = vrot.slane %v423_v22, 4  ;;  %v270_v27 = vcombine.high %v268_v19, %v268_v19  ;;  %v287_v28 = vcombine.high %v285_v21, %v285_v21  ;;  %v437_v30 = vsel %vm422_vm0, %v268_v19, -inf }
  0x40   : > { %v430_v29 = vsel %vm422_vm0, %v269_v20, -inf  ;;  %v438_v33 = vrot.slane %v437_v30, 4  ;;  %v452_v34 = vrot.slane %v451_v25, 4  ;;  %v458_v36 = vsel %vm422_vm0, %v286_v23, -inf }
  0x41   : > { %v425_v31 = vmax.f32 %v423_v22, %v424_v24  ;;  %v431_v32 = vrot.slane %v430_v29, 4  ;;  %v444_v35 = vsel %vm422_vm0, %v270_v27, -inf  ;;  %v465_v37 = vsel %vm422_vm0, %v285_v21, -inf }
  0x42   : > { %v472_v38 = vsel %vm422_vm0, %v287_v28, -inf  ;;  %v439_v41 = vmax.f32 %v437_v30, %v438_v33  ;;  %v445_v42 = vrot.slane %v444_v35, 4  ;;  %v453_v43 = vmax.f32 %v451_v25, %v452_v34 }
  0x43   : > { %v426_v39 = vrot.slane %v425_v31, 2  ;;  %v432_v40 = vmax.f32 %v430_v29, %v431_v32  ;;  %v459_v44 = vrot.slane %v458_v36, 4  ;;  %v466_v45 = vrot.slane %v465_v37, 4 }
  0x44   : > { %v473_v46 = vrot.slane %v472_v38, 4  ;;  %v440_v49 = vrot.slane %v439_v41, 2  ;;  %v446_v50 = vmax.f32 %v444_v35, %v445_v42  ;;  %v454_v51 = vrot.slane %v453_v43, 2 }
  0x45   : > { %v427_v47 = vmax.f32 %v425_v31, %v426_v39  ;;  %v433_v48 = vrot.slane %v432_v40, 2  ;;  %v460_v52 = vmax.f32 %v458_v36, %v459_v44  ;;  %v467_v53 = vmax.f32 %v465_v37, %v466_v45 }
  0x46   : > { %v474_v54 = vmax.f32 %v472_v38, %v473_v46  ;;  %v441_v57 = vmax.f32 %v439_v41, %v440_v49  ;;  %v447_v58 = vrot.slane %v446_v50, 2  ;;  %v455_v59 = vmax.f32 %v453_v43, %v454_v51 }
  0x47   : > { %v428_v55 = vrot.slane %v427_v47, 1  ;;  %v434_v56 = vmax.f32 %v432_v40, %v433_v48  ;;  %v461_v60 = vrot.slane %v460_v52, 2  ;;  %v468_v61 = vrot.slane %v467_v53, 2 }
  0x48   : > { %v475_v62 = vrot.slane %v474_v54, 2  ;;  %v442_v2 = vrot.slane %v441_v57, 1  ;;  %v448_v4 = vmax.f32 %v446_v50, %v447_v58  ;;  %v456_v6 = vrot.slane %v455_v59, 1 }
  0x49   : > { %v429_v63 = vmax.f32 %v427_v47, %v428_v55  ;;  %v435_v1 = vrot.slane %v434_v56, 1  ;;  %v462_v7 = vmax.f32 %v460_v52, %v461_v60  ;;  %v469_v8 = vmax.f32 %v467_v53, %v468_v61 }
  0x4a   : > { %v476_v9 = vmax.f32 %v474_v54, %v475_v62  ;;  %v443_v12 = vmax.f32 %v441_v57, %v442_v2  ;;  %v449_v13 = vrot.slane %v448_v4, 1  ;;  %v303_v14 = vcombine.high %v1484_v18, %v1484_v18 }
  0x4b   : > { %v436_v11 = vmax.f32 %v434_v56, %v435_v1  ;;  %v457_v15 = vmax.f32 %v455_v59, %v456_v6  ;;  %v463_v16 = vrot.slane %v462_v7, 1  ;;  %v470_v17 = vrot.slane %v469_v8, 1 }
  0x4c   : > { %v477_v19 = vrot.slane %v476_v9, 1  ;;  %v450_v20 = vmax.f32 %v448_v4, %v449_v13  ;;  %v304_v22 = vcombine.high %v1491_v26, %v1491_v26  ;;  %v305_v23 = vcombine.high %v241_v10, %v241_v10 }
  0x4d   : > { %v682_v21 = vsel %vm681_vm1, %v436_v11, %v429_v63  ;;  %v464_v24 = vmax.f32 %v462_v7, %v463_v16  ;;  %v471_v25 = vmax.f32 %v469_v8, %v470_v17  ;;  %v312_v30 = vrot.slane %v241_v10, %v1464_v5  ;;  %v242_v10 = vld [vmem:[%s1454_s28 + $0x20] sm:$0xff] }
  0x4e   : > { %v478_v27 = vmax.f32 %v476_v9, %v477_v19  ;;  %v684_v28 = vsel %vm683_vm2, %v443_v12, %v682_v21  ;;  %v319_v31 = vrot.slane %v305_v23, %v1464_v5  ;;  %v479_v32 = vsel %vm422_vm0, %v1484_v18, -inf }
  0x4f   : > { %v686_v29 = vsel %vm685_vm3, %v450_v20, %v684_v28  ;;  %v480_v34 = vrot.slane %v479_v32, 4  ;;  %v486_v35 = vsel %vm422_vm0, %v303_v14, -inf  ;;  %v493_v36 = vsel %vm422_vm0, %v1491_v26, -inf }
  0x50   : > { %v688_v33 = vsel %vm687_vm4, %v457_v15, %v686_v29  ;;  %v320_v38 = vcombine.high %v312_v30, %v312_v30  ;;  %v321_v39 = vcombine.high %v319_v31, %v319_v31  ;;  %v487_v40 = vrot.slane %v486_v35, 4  ;;  %v243_v29 = vld [vmem:[%s1454_s28 + $0x28] sm:$0xff] }
  0x51   : > { %v690_v37 = vsel %vm689_vm5, %v464_v24, %v688_v33  ;;  %v481_v42 = vmax.f32 %v479_v32, %v480_v34  ;;  %v494_v43 = vrot.slane %v493_v36, 4  ;;  %v500_v44 = vsel %vm422_vm0, %v304_v22, -inf }
  0x52   : > { %v692_v41 = vsel %vm691_vm6, %v471_v25, %v690_v37  ;;  %v488_v45 = vmax.f32 %v486_v35, %v487_v40  ;;  %v501_v46 = vrot.slane %v500_v44, 4  ;;  %v507_v47 = vsel %vm422_vm0, %v312_v30, -inf }
  0x53   : > { %v694_v18 = vsel %vm693_vm7, %v478_v27, %v692_v41  ;;  %v482_v26 = vrot.slane %v481_v42, 2  ;;  %v495_v48 = vmax.f32 %v493_v36, %v494_v43  ;;  %v508_v49 = vrot.slane %v507_v47, 4 }
  0x54   : > { %1145 = vmatprep.mubr.msk.f32.mxu0 %vm716_vm8, %v694_v18  ;;  %1155 = vmatprep.mubr.msk.f32.mxu1 %vm716_vm8, %v694_v18  ;;  %v514_v50 = vsel %vm422_vm0, %v320_v38, -inf  ;;  %v489_v51 = vrot.slane %v488_v45, 2  ;;  %v502_v52 = vmax.f32 %v500_v44, %v501_v46  ;;  %v521_v54 = vsel %vm422_vm0, %v319_v31, -inf }
  0x55   : > { %v515_v53 = vrot.slane %v514_v50, 4  ;;  %v483_v55 = vmax.f32 %v481_v42, %v482_v26  ;;  %v496_v56 = vrot.slane %v495_v48, 2  ;;  %v509_v57 = vmax.f32 %v507_v47, %v508_v49 }
  0x56   : > { %v522_v58 = vrot.slane %v521_v54, 4  ;;  %v490_v59 = vmax.f32 %v488_v45, %v489_v51  ;;  %v503_v60 = vrot.slane %v502_v52, 2  ;;  %v528_v62 = vsel %vm422_vm0, %v321_v39, -inf }
  0x57   : > { %v516_v61 = vmax.f32 %v514_v50, %v515_v53  ;;  %v484_v63 = vrot.slane %v483_v55, 1  ;;  %v497_v1 = vmax.f32 %v495_v48, %v496_v56  ;;  %v510_v2 = vrot.slane %v509_v57, 2 }
  0x58   : > { %v523_v4 = vmax.f32 %v521_v54, %v522_v58  ;;  %v491_v6 = vrot.slane %v490_v59, 1  ;;  %v504_v7 = vmax.f32 %v502_v52, %v503_v60  ;;  %v529_v9 = vrot.slane %v528_v62, 4 }
  0x59   : > { %v517_v8 = vrot.slane %v516_v61, 2  ;;  %v485_v11 = vmax.f32 %v483_v55, %v484_v63  ;;  %v498_v12 = vrot.slane %v497_v1, 1  ;;  %v511_v13 = vmax.f32 %v509_v57, %v510_v2 }
  0x5a   : > { %v524_v14 = vrot.slane %v523_v4, 2  ;;  %v492_v15 = vmax.f32 %v490_v59, %v491_v6  ;;  %v505_v16 = vrot.slane %v504_v7, 1  ;;  %v530_v19 = vmax.f32 %v528_v62, %v529_v9 }
  0x5b   : > { %v518_v17 = vmax.f32 %v516_v61, %v517_v8  ;;  %v499_v20 = vmax.f32 %v497_v1, %v498_v12  ;;  %v512_v21 = vrot.slane %v511_v13, 1  ;;  %v322_v23 = vcombine.high %v242_v10, %v242_v10 }
  0x5c   : > { %v525_v22 = vmax.f32 %v523_v4, %v524_v14  ;;  %v506_v24 = vmax.f32 %v504_v7, %v505_v16  ;;  %v531_v27 = vrot.slane %v530_v19, 2  ;;  %v695_v28 = vsel %vm681_vm1, %v492_v15, %v485_v11 }
  0x5d   : > { %v519_v25 = vrot.slane %v518_v17, 1  ;;  %v513_v30 = vmax.f32 %v511_v13, %v512_v21  ;;  %v696_v32 = vsel %vm683_vm2, %v499_v20, %v695_v28  ;;  %v329_v33 = vrot.slane %v242_v10, %v1464_v5 }
  0x5e   : > { %v526_v31 = vrot.slane %v525_v22, 1  ;;  %v532_v35 = vmax.f32 %v530_v19, %v531_v27  ;;  %v697_v36 = vsel %vm685_vm3, %v506_v24, %v696_v32  ;;  %v336_v37 = vrot.slane %v322_v23, %v1464_v5 }
  0x5f   : > { %v520_v34 = vmax.f32 %v518_v17, %v519_v25  ;;  %v698_v39 = vsel %vm687_vm4, %v513_v30, %v697_v36  ;;  %v337_v40 = vcombine.high %v329_v33, %v329_v33  ;;  %v339_v41 = vcombine.high %v243_v29, %v243_v29 }
  0x60   : > { %v527_v38 = vmax.f32 %v525_v22, %v526_v31  ;;  %v533_v42 = vrot.slane %v532_v35, 1  ;;  %v338_v44 = vcombine.high %v336_v37, %v336_v37  ;;  %v346_v18 = vrot.slane %v243_v29, %v1464_v5  ;;  %v244_v29 = vld [vmem:[%s1454_s28 + $0x30] sm:$0xff] }
  0x61   : > { %v699_v43 = vsel %vm689_vm5, %v520_v34, %v698_v39  ;;  %v353_v46 = vrot.slane %v339_v41, %v1464_v5  ;;  %v535_v47 = vsel %vm422_vm0, %v329_v33, -inf  ;;  %v542_v26 = vsel %vm422_vm0, %v337_v40, -inf  ;;  %v245_v41 = vld [vmem:[%s1454_s28 + $0x38] sm:$0xff] }
  0x62   : > { %v700_v45 = vsel %vm691_vm6, %v527_v38, %v699_v43  ;;  %v534_v48 = vmax.f32 %v532_v35, %v533_v42  ;;  %v354_v49 = vcombine.high %v346_v18, %v346_v18  ;;  %v536_v50 = vrot.slane %v535_v47, 4 }
  0x63   : > { %v543_v51 = vrot.slane %v542_v26, 4  ;;  %v355_v52 = vcombine.high %v353_v46, %v353_v46  ;;  %v549_v53 = vsel %vm422_vm0, %v336_v37, -inf  ;;  %v556_v54 = vsel %vm422_vm0, %v338_v44, -inf }
  0x64   : > { %v563_v55 = vsel %vm422_vm0, %v346_v18, -inf  ;;  %v701_v56 = vsel %vm693_vm7, %v534_v48, %v700_v45  ;;  %v537_v57 = vmax.f32 %v535_v47, %v536_v50  ;;  %v550_v59 = vrot.slane %v549_v53, 4 }
  0x65   : > { %v544_v58 = vmax.f32 %v542_v26, %v543_v51  ;;  %1146 = vmatmul.mubr.msk.f32.vlgmr.msra.gmra.mxu0 %vm716_vm8, %v701_v56  ;;  %1156 = vmatmul.mubr.msk.f32.vlgmr.msra.gmra.mxu1 %vm716_vm8, %v701_v56  ;;  %v557_v60 = vrot.slane %v556_v54, 4  ;;  %v564_v61 = vrot.slane %v563_v55, 4  ;;  %v570_v62 = vsel %vm422_vm0, %v354_v49, -inf }
  0x66   : > { %v577_v63 = vsel %vm422_vm0, %v353_v46, -inf  ;;  %v538_v1 = vrot.slane %v537_v57, 2  ;;  %v551_v4 = vmax.f32 %v549_v53, %v550_v59  ;;  %v571_v6 = vrot.slane %v570_v62, 4 }
  0x67   : > { %v545_v2 = vrot.slane %v544_v58, 2  ;;  %v558_v7 = vmax.f32 %v556_v54, %v557_v60  ;;  %v565_v8 = vmax.f32 %v563_v55, %v564_v61  ;;  %v578_v9 = vrot.slane %v577_v63, 4 }
  0x68   : > { %v584_v10 = vsel %vm422_vm0, %v355_v52, -inf  ;;  %v539_v11 = vmax.f32 %v537_v57, %v538_v1  ;;  %v552_v13 = vrot.slane %v551_v4, 2  ;;  %v572_v14 = vmax.f32 %v570_v62, %v571_v6 }
  0x69   : > { %v546_v12 = vmax.f32 %v544_v58, %v545_v2  ;;  %v559_v15 = vrot.slane %v558_v7, 2  ;;  %v566_v16 = vrot.slane %v565_v8, 2  ;;  %v579_v17 = vmax.f32 %v577_v63, %v578_v9 }
  0x6a   : > { %v585_v19 = vrot.slane %v584_v10, 4  ;;  %v540_v20 = vrot.slane %v539_v11, 1  ;;  %v553_v22 = vmax.f32 %v551_v4, %v552_v13  ;;  %v573_v23 = vrot.slane %v572_v14, 2 }
  0x6b   : > { %v547_v21 = vrot.slane %v546_v12, 1  ;;  %v560_v24 = vmax.f32 %v558_v7, %v559_v15  ;;  %v567_v25 = vmax.f32 %v565_v8, %v566_v16  ;;  %v580_v27 = vrot.slane %v579_v17, 2 }
  0x6c   : > { %v586_v28 = vmax.f32 %v584_v10, %v585_v19  ;;  %v541_v30 = vmax.f32 %v539_v11, %v540_v20  ;;  %v554_v32 = vrot.slane %v553_v22, 1  ;;  %v574_v33 = vmax.f32 %v572_v14, %v573_v23 }
  0x6d   : > { %v548_v31 = vmax.f32 %v546_v12, %v547_v21  ;;  %v561_v34 = vrot.slane %v560_v24, 1  ;;  %v568_v35 = vrot.slane %v567_v25, 1  ;;  %v581_v36 = vmax.f32 %v579_v17, %v580_v27 }
  0x6e   : > { %v587_v37 = vrot.slane %v586_v28, 2  ;;  %v555_v38 = vmax.f32 %v553_v22, %v554_v32  ;;  %v575_v39 = vrot.slane %v574_v33, 1  ;;  %v356_v42 = vcombine.high %v244_v29, %v244_v29 }
  0x6f   : > { %v702_v40 = vsel %vm681_vm1, %v548_v31, %v541_v30  ;;  %v562_v43 = vmax.f32 %v560_v24, %v561_v34  ;;  %v569_v44 = vmax.f32 %v567_v25, %v568_v35  ;;  %v582_v18 = vrot.slane %v581_v36, 1 }
  0x70   : > { %v588_v45 = vmax.f32 %v586_v28, %v587_v37  ;;  %v576_v46 = vmax.f32 %v574_v33, %v575_v39  ;;  %v703_v47 = vsel %vm683_vm2, %v555_v38, %v702_v40  ;;  %v363_v26 = vrot.slane %v244_v29, %v1464_v5 }
  0x71   : > { %v370_v48 = vrot.slane %v356_v42, %v1464_v5  ;;  %v583_v49 = vmax.f32 %v581_v36, %v582_v18  ;;  %v704_v51 = vsel %vm685_vm3, %v562_v43, %v703_v47  ;;  %v373_v52 = vcombine.high %v245_v41, %v245_v41 }
  0x72   : > { %v589_v50 = vrot.slane %v588_v45, 1  ;;  %v705_v53 = vsel %vm687_vm4, %v569_v44, %v704_v51  ;;  %v371_v54 = vcombine.high %v363_v26, %v363_v26  ;;  %v380_v56 = vrot.slane %v245_v41, %v1464_v5 }
  0x73   : > { %v372_v55 = vcombine.high %v370_v48, %v370_v48  ;;  %v706_v58 = vsel %vm689_vm5, %v576_v46, %v705_v53  ;;  %v387_v59 = vrot.slane %v373_v52, %v1464_v5  ;;  %v591_v60 = vsel %vm422_vm0, %v363_v26, -inf }
  0x74   : > { %v590_v57 = vmax.f32 %v588_v45, %v589_v50  ;;  %v707_v61 = vsel %vm691_vm6, %v583_v49, %v706_v58  ;;  %v388_v62 = vcombine.high %v380_v56, %v380_v56  ;;  %v592_v63 = vrot.slane %v591_v60, 4 }
  0x75   : > { %v598_v1 = vsel %vm422_vm0, %v371_v54, -inf  ;;  %v389_v4 = vcombine.high %v387_v59, %v387_v59  ;;  %v605_v7 = vsel %vm422_vm0, %v370_v48, -inf  ;;  %v612_v9 = vsel %vm422_vm0, %v372_v55, -inf }
  0x76   : > { %v708_v2 = vsel %vm693_vm7, %v590_v57, %v707_v61  ;;  %v599_v6 = vrot.slane %v598_v1, 4  ;;  %v593_v8 = vmax.f32 %v591_v60, %v592_v63  ;;  %v606_v5 = vrot.slane %v605_v7, 4 }
  0x77   : > { %1148 = vmatprep.mubr.msk.f32.mxu0 %vm716_vm8, %v708_v2  ;;  %1158 = vmatprep.mubr.msk.f32.mxu1 %vm716_vm8, %v708_v2  ;;  %v619_v10 = vsel %vm422_vm0, %v380_v56, -inf  ;;  %v613_v12 = vrot.slane %v612_v9, 4  ;;  %v626_v14 = vsel %vm422_vm0, %v388_v62, -inf  ;;  %v633_v19 = vsel %vm422_vm0, %v387_v59, -inf }
  0x78   : > { %v600_v11 = vmax.f32 %v598_v1, %v599_v6  ;;  %v620_v13 = vrot.slane %v619_v10, 4  ;;  %v594_v15 = vrot.slane %v593_v8, 2  ;;  %v607_v16 = vmax.f32 %v605_v7, %v606_v5 }
  0x79   : > { %v627_v17 = vrot.slane %v626_v14, 4  ;;  %v614_v21 = vmax.f32 %v612_v9, %v613_v12  ;;  %v634_v23 = vrot.slane %v633_v19, 4  ;;  %v640_v28 = vsel %vm422_vm0, %v389_v4, -inf }
  0x7a   : > { %v601_v20 = vrot.slane %v600_v11, 2  ;;  %v621_v22 = vmax.f32 %v619_v10, %v620_v13  ;;  %v595_v24 = vmax.f32 %v593_v8, %v594_v15  ;;  %v608_v25 = vrot.slane %v607_v16, 2 }
  0x7b   : > { %v628_v27 = vmax.f32 %v626_v14, %v627_v17  ;;  %v615_v30 = vrot.slane %v614_v21, 2  ;;  %v635_v32 = vmax.f32 %v633_v19, %v634_v23  ;;  %v641_v36 = vrot.slane %v640_v28, 4 }
  0x7c   : > { %v602_v29 = vmax.f32 %v600_v11, %v601_v20  ;;  %v622_v31 = vrot.slane %v621_v22, 2  ;;  %v596_v33 = vrot.slane %v595_v24, 1  ;;  %v609_v34 = vmax.f32 %v607_v16, %v608_v25 }
  0x7d   : > { %v629_v35 = vrot.slane %v628_v27, 2  ;;  %v616_v38 = vmax.f32 %v614_v21, %v615_v30  ;;  %v636_v40 = vrot.slane %v635_v32, 2  ;;  %v642_v44 = vmax.f32 %v640_v28, %v641_v36 }
  0x7e   : > { %v603_v37 = vrot.slane %v602_v29, 1  ;;  %v623_v39 = vmax.f32 %v621_v22, %v622_v31  ;;  %v597_v41 = vmax.f32 %v595_v24, %v596_v33  ;;  %v610_v42 = vrot.slane %v609_v34, 1 }
  0x7f   : > { %v630_v43 = vmax.f32 %v628_v27, %v629_v35  ;;  %v617_v45 = vrot.slane %v616_v38, 1  ;;  %v637_v47 = vmax.f32 %v635_v32, %v636_v40  ;;  %v643_v49 = vrot.slane %v642_v44, 2 }
  0x80   : > { %v604_v18 = vmax.f32 %v602_v29, %v603_v37  ;;  %v624_v46 = vrot.slane %v623_v39, 1  ;;  %v611_v26 = vmax.f32 %v609_v34, %v610_v42  ;;  %v923_v32 = vand.u32 127, %v258_v0 }
  0x81   : > { %v631_v48 = vrot.slane %v630_v43, 1  ;;  %v618_v50 = vmax.f32 %v616_v38, %v617_v45  ;;  %v638_v52 = vrot.slane %v637_v47, 1  ;;  %v644_v55 = vmax.f32 %v642_v44, %v643_v49 }
  0x82   : > { %v625_v51 = vmax.f32 %v623_v39, %v624_v46  ;;  %v709_v53 = vsel %vm681_vm1, %v604_v18, %v597_v41  ;;  %v926_v34 = vsub.s32 %v923_v32, %v1461_v3 }
  0x83   : > { %v632_v54 = vmax.f32 %v630_v43, %v631_v48  ;;  %v710_v56 = vsel %vm683_vm2, %v611_v26, %v709_v53  ;;  %v639_v57 = vmax.f32 %v637_v47, %v638_v52  ;;  %v645_v59 = vrot.slane %v644_v55, 1 }
  0x84   : > { %v711_v58 = vsel %vm685_vm3, %v618_v50, %v710_v56 }
  0x85   : > { %v712_v60 = vsel %vm687_vm4, %v625_v51, %v711_v58  ;;  %v646_v62 = vmax.f32 %v644_v55, %v645_v59 }
  0x86   : > { %v713_v61 = vsel %vm689_vm5, %v632_v54, %v712_v60 }
  0x87   : > { %v714_v63 = vsel %vm691_vm6, %v639_v57, %v713_v61 }
  0x88   : > { %v715_v1 = vsel %vm693_vm7, %v646_v62, %v714_v63 }
  0x89   : > { %1149 = vmatmul.mubr.msk.f32.gmra.mxu0 %vm716_vm8, %v715_v1  ;;  %1159 = vmatmul.mubr.msk.f32.gmra.mxu1 %vm716_vm8, %v715_v1 }
 0x125   : > { %v1147_v2 = vpop.f32.mrf.mxu0  ;;  %v1157_v4 = vpop.f32.mrf.mxu1 }
 0x126   : > { %v898_v6 = vmax.f32 %v1147_v2, %v1157_v4 }
 0x127   : > { %v791_v7 = vpop.f32.mrf.mxu0  ;;  %v878_v8 = vpop.f32.mrf.mxu1 }
 0x128   : > { %903 = vst.msk [vmem:[%s1581_s11 + $0x8] sm:$0xff] %vm901_vm9, %v898_v6  ;;  %v897_v5 = vmax.f32 %v791_v7, %v878_v8  ;;  %v909_v9 = vsel %vm901_vm9, %v898_v6, 0.0  ;;  %v949_v10 = vmul.f32 %v898_v6, %v898_v6 }
 0x129   : > { %910 = vadd.xlane.f32.xlu0 %v909_v9 }
 0x12a   : > { %902 = vst.msk [vmem:[%s1581_s11] sm:$0xff] %vm901_vm9, %v897_v5  ;;  %v955_v11 = vsel %vm901_vm9, %v949_v10, 0.0  ;;  %v948_v12 = vmul.f32 %v897_v5, %v897_v5  ;;  %v906_v13 = vsel %vm901_vm9, %v897_v5, 0.0 }
 0x12b   : > { %956 = vadd.xlane.f32.xlu1 %v955_v11 }
 0x12c   : > { %v952_v14 = vsel %vm901_vm9, %v948_v12, 0.0 }
 0x12d   : > { %907 = vadd.xlane.f32.xlu0 %v906_v13 }
 0x12f   : > { %953 = vadd.xlane.f32.xlu1 %v952_v14 }
 0x149   : > { %v1160_v15 = vpop.f32.mrf.mxu1  ;;  %v1150_v16 = vpop.f32.mrf.mxu0 }
 0x14a   : > { %v900_v17 = vmax.f32 %v1150_v16, %v1160_v15 }
 0x14b   : > { %v888_v19 = vpop.f32.mrf.mxu1  ;;  %v801_v20 = vpop.f32.mrf.mxu0 }
 0x14c   : > { %905 = vst.msk [vmem:[%s1581_s11 + $0x18] sm:$0xff] %vm901_vm9, %v900_v17  ;;  %v899_v21 = vmax.f32 %v801_v20, %v888_v19  ;;  %v951_v25 = vmul.f32 %v900_v17, %v900_v17  ;;  %v915_v27 = vsel %vm901_vm9, %v900_v17, 0.0 }
 0x14e   : > { %904 = vst.msk [vmem:[%s1581_s11 + $0x10] sm:$0xff] %vm901_vm9, %v899_v21  ;;  %v912_v22 = vsel %vm901_vm9, %v899_v21, 0.0  ;;  %v950_v23 = vmul.f32 %v899_v21, %v899_v21  ;;  %v961_v28 = vsel %vm901_vm9, %v951_v25, 0.0 }
 0x14f   : > { %913 = vadd.xlane.f32.xlu0 %v912_v22 }
 0x150   : > { %v958_v24 = vsel %vm901_vm9, %v950_v23, 0.0 }
 0x151   : > { %959 = vadd.xlane.f32.xlu1 %v958_v24 }
 0x153   : > { %916 = vadd.xlane.f32.xlu0 %v915_v27 }
 0x155   : > { %962 = vadd.xlane.f32.xlu1 %v961_v28 }
 0x1b2   : > { %v911_v29 = vpop.xlane.xlu0 %910 }
 0x1b3   : > { %v931_v39 = vrot.slane %v911_v29, %v926_v34 }
 0x1b4   : > { %v957_v30 = vpop.xlane.xlu1 %956 }
 0x1b5   : > { %v975_v43 = vrot.slane %v957_v30, %v926_v34 }
 0x1b6   : > { %v908_v31 = vpop.xlane.xlu0 %907 }
 0x1b7   : > { %v927_v36 = vrot.slane %v908_v31, %v926_v34 }
 0x1b8   : > { %v954_v33 = vpop.xlane.xlu1 %953 }
 0x1b9   : > { %v971_v40 = vrot.slane %v954_v33, %v926_v34  ;;  %v940_v44 = vsel %vm681_vm1, %v931_v39, %v927_v36 }
 0x1bb   : > { %v984_v0 = vsel %vm681_vm1, %v975_v43, %v971_v40 }
 0x1d8   : > { %v914_v35 = vpop.xlane.xlu0 %913 }
 0x1d9   : > { %v935_v37 = vrot.slane %v914_v35, %v926_v34 }
 0x1da   : > { %v960_v38 = vpop.xlane.xlu1 %959 }
 0x1db   : > { %v979_v41 = vrot.slane %v960_v38, %v926_v34  ;;  %v941_v46 = vsel %vm683_vm2, %v935_v37, %v940_v44 }
 0x1dc   : > { %v917_v42 = vpop.xlane.xlu0 %916 }
 0x1dd   : > { %v939_v18 = vrot.slane %v917_v42, %v926_v34  ;;  %v985_v48 = vsel %vm683_vm2, %v979_v41, %v984_v0 }
 0x1de   : > { %v963_v45 = vpop.xlane.xlu1 %962 }
 0x1df   : > { %v983_v47 = vrot.slane %v963_v45, %v926_v34  ;;  %v942_v3 = vsel %vm685_vm3, %v939_v18, %v941_v46 }
 0x1e0   : > { %v945_v26 = vsel %vm944_vm10, %v942_v3, 0.0 }
 0x1e1   : > { %946 = vadd.xlane.f32.xlu0 %v945_v26  ;;  %v986_v49 = vsel %vm685_vm3, %v983_v47, %v985_v48 }
 0x1e2   : > { %v988_v50 = vsel %vm944_vm10, %v986_v49, 0.0 }
 0x1e3   : > { %989 = vadd.xlane.f32.xlu1 %v988_v50 }
 0x268   : > { %994 = sbr.rel (%p1121_p11) target bundleno = 623 (0x26f), region = 40 }
 0x26a   : > { %v947_v51 = vpop.xlane.xlu0 %946 }
 0x26c   : > { %v990_v52 = vpop.xlane.xlu1 %989 }
 0x26d   : > { %vm995_vm11 = vcmask 3072   ;;  %v1319_v53 = vmov 0.0  }
 0x26e   : > { %996 = vst.msk [vmem:[%s1680_s4] sm:$0xf] %vm995_vm11, %v1319_v53  ;;  %997 = vst.msk [vmem:[%s1681_s5] sm:$0xf] %vm995_vm11, %v1319_v53 }
 0x26f PF: > { %vm1000_vm12 = vcmask 3072   ;;  %s1128_s29 = sshll.u32 %s1374_s22, 9  ;;  %s1019_s16 = sshll.u32 %s1581_s11, 4  ;;  %s1627_s16 = int_to_ptr.vmem [resolvable:$true] %s1019_s16 }
 0x270   : > { %s1625_s9 = scalar_lea.hbm %s1679_s3, %s1128_s29  ;;  %s1006_s22 = scalar_lea.sflag [#allocation4], %s1450_s23 }
 0x271   : > { %s1249_s11 = scalar_lea.vmem %s1627_s16, 512  ;;  %p1690_p13 = scmp.ne.s32.totalorder %s1686_s30, 0 }
 0x272   : > { %p1250_p12 = scmp.ne.s32.totalorder %s1627_s16, %s1249_s11  ;;  %s1320_s26 = smov [#allocation5]  }
 0x273   : > { %s1253_s28 = sshll.u32 %s1320_s26, 4  ;;  %s1254_s28 = int_to_ptr.vmem [resolvable:$false] %s1253_s28 }
 0x274   : > { %p1251_p4 = pnand %p1250_p12, %p1690_p13  ;;  %s1255_s12 = scalar_lea.vmem %s1254_s28, 1024 }
 0x275   : > { %v998_v54 = vld [vmem:[%s1680_s4] sm:$0xf]  ;;  %p1256_p7 = scmp.lt.s32.totalorder %s1627_s16, %s1254_s28  ;;  %p1257_p8 = scmp.lt.s32.totalorder %s1255_s12, %s1249_s11 }
 0x276   : > { %v1002_v55 = vld [vmem:[%s1681_s5] sm:$0xf]  ;;  %v999_v56 = vadd.f32 %v998_v54, %v947_v51  ;;  %p1252_p5 = pneg %p1251_p4 }
 0x277   : > { %v1003_v57 = vadd.f32 %v1002_v55, %v990_v52  ;;  %p1258_p10 = por %p1257_p8, %p1256_p7 }
 0x278   : > { %1001 = vst.msk [vmem:[%s1680_s4] sm:$0xf] %vm1000_vm12, %v999_v56 }
 0x279   : > { %1004 = vst.msk [vmem:[%s1681_s5] sm:$0xf] %vm1000_vm12, %v1003_v57  ;;  %p1259_p0 = pnand %p1258_p10, %p1252_p5 }
 0x27b   : > { %1262 = shalt.err (!%p1259_p0)
}
 0x27c   : > { %s1263_s14 = scalar_lea.hbm %s1625_s9, 512  ;;  %s1267_s8 = scalar_lea.hbm %s1679_s3, 1024 }
 0x27d   : > { %p1264_p2 = scmp.ne.s32.totalorder %s1625_s9, %s1263_s14  ;;  %p1268_p3 = scmp.lt.s32.totalorder %s1625_s9, %s1679_s3 }
 0x27e   : > { %p1269_p6 = scmp.lt.s32.totalorder %s1267_s8, %s1263_s14 }
 0x27f   : > { %p1265_p9 = pnand %p1264_p2, %p1690_p13 }
 0x280   : > { %p1270_p11 = por %p1269_p6, %p1268_p3 }
 0x281   : > { %p1266_p1 = pneg %p1265_p9 }
 0x283   : > { %p1271_p12 = pnand %p1270_p11, %p1266_p1 }
 0x285   : > { %1274 = shalt.err (!%p1271_p12)
}
 0x286   : > { %s1321_s13 = smov 128   ;;  %s1322_s17 = smov 8  }
 0x287   : > { %1163 = dma.vmem_to_hbm [thread:$0]  (%p1690_p13), %s1627_s16, 512, %s1625_s9, %s1006_s22, %s1321_s13, %s1321_s13, %s1322_s17  }
 0x288 PF: > { %s1046_s25 = sand.u32 1, %s1301_s18   ;;  %p1691_p4 = scmp.ne.s32.totalorder %s1687_s6, 0 }
 0x289   : > { %p1692_p5 = scmp.ge.s32.totalorder %s1313_s21, 2  ;;  %s1047_s11 = scalar_lea.sflag [#allocation4], %s1046_s25 }
 0x28b   : > { %p1170_p7 = pnand %p1692_p5, %p1691_p4 }
 0x28d   : > { %p1171_p8 = pneg %p1170_p7 }
 0x28f   : > { %1296 = dma.done.wait (%p1171_p8), %s1047_s11, 512  }
 0x290   : > { %1298 = vsyncadd (%p1171_p8), %s1047_s11, 4294966784  ;;  %p19_p10 = scmp.ge.s32.totalorder %s1378_s24, 4   ;;  %s1693_s18 = smov %s1305_s19 }
 0x291   : > { %s1694_s19 = smov %s1309_s20  ;;  %s1695_s20 = smov %s1390_s27 }
 0x292   : > { %s1696_s21 = smov %s1378_s24  ;;  %21 = sbr.rel (!%p19_p10) target bundleno = 5 (0x5), region = 97 }
 0x297   :  { %1052 = vsyncpa [#allocation3], 1 }
 0x298   :  { %1054 = vsyncpa [#allocation3 + $0x1], 1 }
 0x299   :  { %1055 = vsyncpa [#allocation4], 1 }
 0x29a   :  { %1057 = vsyncpa [#allocation4 + $0x1], 1 }

</bundles_post_ra>
